<compile_context>
chip_gen: v7x
topology: tpu7x:2x2x1
jax: 0.10.0
libtpu: 0.0.40
codegen_flags: <defaults>
</compile_context>

<pallas_src>
import jax
import jax.numpy as jnp
from jax.experimental import pallas as pl
from jax.experimental.pallas import tpu as pltpu

_LANE = 128
_PREFERRED_TILE = 512   # measured sweet spot for mem-bound tiles (~85% roofline)
_MIN_PALLAS_HW = 128    # below one lane row, kernel-launch overhead dominates


def _round_up(x, m):
    return -(-x // m) * m


def _pick_hw_tile(hw):
    """Return (tile, padded_hw). Always lane-dense: pad HW up, never shrink T."""
    if hw <= _PREFERRED_TILE:
        hw_pad = _round_up(hw, _LANE)
        return hw_pad, hw_pad
    hw_pad = _round_up(hw, _PREFERRED_TILE)
    return _PREFERRED_TILE, hw_pad


def _detect_level_kernel(x_ref, w_ref, coef_ref, gx_ref, gy_ref, raw_ref, dec_ref):
    # x_ref:    (1, C+1, T)  features for one batch / HW tile, last row == 1
    # w_ref:    (nao, C+1)   1x1 conv weight with the bias as its last column
    # coef_ref: (nao, 4)     decode coefficients [A, B, GX, GY]
    # gx/gy:    (1, T)       (xv - 0.5) / (yv - 0.5) grid rows for this tile
    # raw_ref:  (1, nao, T)  pre-sigmoid conv output (returned as x[i])
    # dec_ref:  (1, nao, T)  decoded boxes / confidences
    v = jnp.dot(w_ref[...], x_ref[0], preferred_element_type=jnp.float32)  # (nao, T)
    raw_ref[0] = v.astype(raw_ref.dtype)

    s = jax.nn.sigmoid(v)
    coef = coef_ref[...]
    A, B = coef[:, 0:1], coef[:, 1:2]
    GX, GY = coef[:, 2:3], coef[:, 3:4]
    dec = (A * s + B) * s + GX * gx_ref[...] + GY * gy_ref[...]
    dec_ref[0] = dec.astype(dec_ref.dtype)


def _detect_level_pallas(x_aug, w_aug, coef, gx, gy, tile, out_dtype):
    """Fused conv + sigmoid + decode for one detection level."""
    N, C1, hw_pad = x_aug.shape
    nao = w_aug.shape[0]
    n_tiles = hw_pad // tile

    # VMEM limit derived from the actual double-buffered block footprint
    # (v7x: 64 MiB/TC, v5e/v6e: 128 MiB) instead of a fixed oversized request.
    in_b = x_aug.dtype.itemsize
    out_b = jnp.dtype(out_dtype).itemsize
    stream = C1 * tile * in_b + 2 * nao * tile * out_b + 2 * tile * 4
    const = nao * C1 * in_b + nao * 4 * 4
    vmem_limit = int(min(max(2 * stream + const + (4 << 20), 16 << 20), 64 << 20))

    return pl.pallas_call(
        _detect_level_kernel,
        out_shape=(
            jax.ShapeDtypeStruct((N, nao, hw_pad), out_dtype),
            jax.ShapeDtypeStruct((N, nao, hw_pad), out_dtype),
        ),
        # HW-tile axis leads so both v7x TensorCores get work even when N == 1.
        grid=(n_tiles, N),
        in_specs=[
            pl.BlockSpec((1, C1, tile), lambda t, n: (n, 0, t)),
            pl.BlockSpec((nao, C1), lambda t, n: (0, 0)),
            pl.BlockSpec((nao, 4), lambda t, n: (0, 0)),
            pl.BlockSpec((1, tile), lambda t, n: (0, t)),
            pl.BlockSpec((1, tile), lambda t, n: (0, t)),
        ],
        out_specs=(
            pl.BlockSpec((1, nao, tile), lambda t, n: (n, 0, t)),
            pl.BlockSpec((1, nao, tile), lambda t, n: (n, 0, t)),
        ),
        compiler_params=pltpu.CompilerParams(
            dimension_semantics=("parallel", "parallel"),
            vmem_limit_bytes=vmem_limit,
        ),
    )(x_aug, w_aug, coef, gx, gy)


def detect_forward(xs, weights, biases, anchors, strides, nc, *, export=False,
                   out_dtype=None):
    """JAX/Pallas equivalent of yolov5 Detect.forward (inference mode).

    xs:       list of NCHW feature maps (one per level), any float dtype
    weights:  list of (na*no, C_in) 1x1-conv weights
    biases:   list of (na*no,) conv biases
    anchors:  (nl, na, 2) float array
    strides:  sequence of per-level strides
    Returns (cat(z, 1), [raw_i ...]) — or (cat(z, 1),) when export=True —
    matching the PyTorch module.
    """
    nl = len(xs)
    na = int(anchors.shape[1])
    no = nc + 5
    nao = na * no

    z, raws = [], []
    for i in range(nl):
        x = xs[i]
        N, C, ny, nx = x.shape
        hw = ny * nx
        s_i = float(strides[i])
        a_i = anchors[i].astype(jnp.float32)                   # (na, 2)
        in_dtype = x.dtype
        lvl_out_dtype = jnp.dtype(out_dtype) if out_dtype is not None else in_dtype

        # Decode folded into 4 per-channel coefficients (bias lives inside W):
        #   dec = A*s^2 + B*s + GX*gx + GY*gy,   s = sigmoid(conv + bias)
        j = jnp.arange(no, dtype=jnp.float32)
        B_j = jnp.where(j < 2, 2.0 * s_i, jnp.where(j < 4, 0.0, 1.0))
        GX_j = jnp.where(j == 0, s_i, 0.0)
        GY_j = jnp.where(j == 1, s_i, 0.0)
        A = jnp.zeros((na, no), jnp.float32)
        A = A.at[:, 2].set(4.0 * s_i * a_i[:, 0])               # w anchor
        A = A.at[:, 3].set(4.0 * s_i * a_i[:, 1])               # h anchor
        coef = jnp.stack(
            [A,
             jnp.broadcast_to(B_j, (na, no)),
             jnp.broadcast_to(GX_j, (na, no)),
             jnp.broadcast_to(GY_j, (na, no))],
            axis=-1,
        ).reshape(nao, 4)

        # Flattened (row-major over (ny, nx)) grid rows, already -0.5 shifted.
        xv = jnp.tile(jnp.arange(nx, dtype=jnp.float32), (ny,))
        yv = jnp.repeat(jnp.arange(ny, dtype=jnp.float32), nx)
        gx = (xv - 0.5).reshape(1, hw)
        gy = (yv - 0.5).reshape(1, hw)

        if hw < _MIN_PALLAS_HW:
            # Tiny level: launch/pipeline overhead > work — plain XLA path.
            v = (jnp.einsum("oc,nchw->nohw", weights[i].astype(jnp.float32),
                            x.astype(jnp.float32)).reshape(N, nao, hw)
                 + biases[i].astype(jnp.float32)[None, :, None])
            sg = jax.nn.sigmoid(v)
            dec = ((coef[:, 0:1] * sg + coef[:, 1:2]) * sg
                   + coef[:, 2:3] * gx[None] + coef[:, 3:4] * gy[None])
            raw_flat = v.astype(lvl_out_dtype)
            dec_flat = dec.astype(lvl_out_dtype)
        else:
            tile, hw_pad = _pick_hw_tile(hw)
            # Bias folded into the matmul: ones row on x, bias column on W.
            w_aug = jnp.concatenate(
                [weights[i], biases[i][:, None]], axis=1).astype(in_dtype)
            x_aug = jnp.concatenate(
                [x.reshape(N, C, hw), jnp.ones((N, 1, hw), in_dtype)], axis=1)
            if hw_pad != hw:
                pad = hw_pad - hw
                x_aug = jnp.pad(x_aug, ((0, 0), (0, 0), (0, pad)))
                gx_p = jnp.pad(gx, ((0, 0), (0, pad)))
                gy_p = jnp.pad(gy, ((0, 0), (0, pad)))
            else:
                gx_p, gy_p = gx, gy
            raw_flat, dec_flat = _detect_level_pallas(
                x_aug, w_aug, coef, gx_p, gy_p, tile, lvl_out_dtype)
            if hw_pad != hw:
                raw_flat = raw_flat[:, :, :hw]
                dec_flat = dec_flat[:, :, :hw]

        # Layout plumbing (memcpy-class) stays in XLA:
        # (N, na*no, hw) -> (N, na, ny, nx, no)
        dec5 = dec_flat.reshape(N, na, no, ny, nx).transpose(0, 1, 3, 4, 2)
        z.append(dec5.reshape(N, na * ny * nx, no))
        if not export:
            raws.append(
                raw_flat.reshape(N, na, no, ny, nx).transpose(0, 1, 3, 4, 2))

    z_cat = jnp.concatenate(z, axis=1)
    return (z_cat,) if export else (z_cat, raws)


def _detect_reference(xs, weights, biases, anchors, strides, nc):
    """Pure-JAX reference mirroring the PyTorch Detect.forward (inference)."""
    na = int(anchors.shape[1])
    no = nc + 5
    z, raws = [], []
    for i, x in enumerate(xs):
        N, C, ny, nx = x.shape
        v = jnp.einsum(
            "oc,nchw->nohw", weights[i], x, precision=jax.lax.Precision.HIGHEST
        ) + biases[i][None, :, None, None]
        v = v.reshape(N, na, no, ny, nx).transpose(0, 1, 3, 4, 2)  # (N,na,ny,nx,no)
        raws.append(v)
        s = jax.nn.sigmoid(v)
        yv, xv = jnp.meshgrid(
            jnp.arange(ny, dtype=jnp.float32),
            jnp.arange(nx, dtype=jnp.float32),
            indexing="ij",
        )
        grid = jnp.stack((xv, yv), axis=-1) - 0.5                  # (ny,nx,2)
        anchor_grid = (anchors[i] * strides[i]).reshape(1, na, 1, 1, 2)
        xy = (s[..., 0:2] * 2.0 + grid) * strides[i]
        wh = (s[..., 2:4] * 2.0) ** 2 * anchor_grid
        conf = s[..., 4:]
        y = jnp.concatenate((xy, wh, conf), axis=-1)
        z.append(y.reshape(N, na * ny * nx, no))
    return jnp.concatenate(z, axis=1), raws


if __name__ == "__main__":
    key = jax.random.PRNGKey(0)

    # Small Detect config: 3 levels, 3 anchors/level, nc=3 -> no=8, na*no=24.
    nc = 3
    na = 3
    nl = 3
    no = nc + 5
    nao = na * no
    ch = (4, 8, 16)
    strides = (8.0, 16.0, 32.0)
    # e.g. a 192x224 input: hw = 672 (padded tiles), 168 (padded single tile),
    # 42 (tiny -> XLA path).
    spatial = ((24, 28), (12, 14), (6, 7))
    anchors = jnp.array(
        [
            [[1.25, 1.625], [2.0, 3.75], [4.125, 2.875]],
            [[1.875, 3.8125], [3.875, 2.8125], [3.6875, 7.4375]],
            [[3.625, 2.8125], [4.875, 6.1875], [11.65625, 10.1875]],
        ],
        dtype=jnp.float32,
    )

    keys = jax.random.split(key, 3 * nl)
    xs, weights, biases = [], [], []
    for i in range(nl):
        ny, nx = spatial[i]
        xs.append(jax.random.normal(keys[3 * i], (2, ch[i], ny, nx), jnp.float32))
        weights.append(
            jax.random.normal(keys[3 * i + 1], (nao, ch[i]), jnp.float32)
            / jnp.sqrt(float(ch[i]))
        )
        biases.append(0.1 * jax.random.normal(keys[3 * i + 2], (nao,), jnp.float32))

    # f32 path (module-default semantics).
    out, raw_list = detect_forward(xs, weights, biases, anchors, strides, nc)
    out = jax.block_until_ready(out)
    raw_list = [jax.block_until_ready(r) for r in raw_list]

    ref_out, ref_raws = _detect_reference(xs, weights, biases, anchors, strides, nc)

    assert out.shape == ref_out.shape
    assert bool(jnp.allclose(out, ref_out, rtol=2e-3, atol=2e-2)), "decoded mismatch"
    for r, rr in zip(raw_list, ref_raws):
        assert r.shape == rr.shape
        assert bool(jnp.allclose(r, rr, rtol=2e-3, atol=2e-2)), "raw mismatch"

    # bf16 native-dtype passthrough: in-kernel math stays f32, HBM traffic
    # (input DMA, both outputs, and the wrapper transposes) is halved.
    xs_bf = [x.astype(jnp.bfloat16) for x in xs]
    out_bf, raws_bf = detect_forward(xs_bf, weights, biases, anchors, strides, nc)
    out_bf = jax.block_until_ready(out_bf)
    assert out_bf.dtype == jnp.bfloat16
    out_bf32 = out_bf.astype(jnp.float32)
    assert bool(jnp.all(jnp.isfinite(out_bf32)))
    assert bool(jnp.allclose(out_bf32, ref_out, rtol=8e-2, atol=1.0)), "bf16 mismatch"

    # export mode: skips materializing the permuted raw feature maps entirely.
    (out_exp,) = detect_forward(xs, weights, biases, anchors, strides, nc,
                                export=True)
    out_exp = jax.block_until_ready(out_exp)
    assert bool(jnp.allclose(out_exp, ref_out, rtol=2e-3, atol=2e-2))

    print("KERNEL_OK")
</pallas_src>

<mosaic_0001>
module attributes {stable_mosaic.version = 11 : i64} {
  func.func @_detect_level_kernel(%arg0: i32, %arg1: i32, %arg2: memref<1x5x512xf32, #tpu.memory_space<vmem>>, %arg3: memref<24x5xf32, #tpu.memory_space<vmem>>, %arg4: memref<24x4xf32, #tpu.memory_space<vmem>>, %arg5: memref<1x512xf32, #tpu.memory_space<vmem>>, %arg6: memref<1x512xf32, #tpu.memory_space<vmem>>, %arg7: memref<1x24x512xf32, #tpu.memory_space<vmem>>, %arg8: memref<1x24x512xf32, #tpu.memory_space<vmem>>) attributes {dimension_semantics = [#tpu.dimension_semantics<parallel>, #tpu.dimension_semantics<parallel>], iteration_bounds = array<i64: 2, 2>, scalar_prefetch = 0 : i64, scratch_operands = 0 : i64, tpu.core_type = #tpu.core_type<tc>, window_params = [{transform_indices = @transform_0, window_bounds = array<i64: 1, 5, 512>}, {pipeline_mode = #tpu.pipeline_mode<synchronous>, transform_indices = @transform_1, window_bounds = array<i64: 24, 5>}, {pipeline_mode = #tpu.pipeline_mode<synchronous>, transform_indices = @transform_2, window_bounds = array<i64: 24, 4>}, {transform_indices = @transform_3, window_bounds = array<i64: 1, 512>}, {transform_indices = @transform_4, window_bounds = array<i64: 1, 512>}, {transform_indices = @transform_5, window_bounds = array<i64: 1, 24, 512>}, {transform_indices = @transform_6, window_bounds = array<i64: 1, 24, 512>}]} {
    %c0 = arith.constant 0 : index
    %c0_0 = arith.constant 0 : index
    %0 = vector.load %arg3[%c0, %c0_0] : memref<24x5xf32, #tpu.memory_space<vmem>>, vector<24x5xf32>
    %c0_1 = arith.constant 0 : index
    %c0_2 = arith.constant 0 : index
    %c0_3 = arith.constant 0 : index
    %1 = vector.load %arg2[%c0_1, %c0_2, %c0_3] : memref<1x5x512xf32, #tpu.memory_space<vmem>>, vector<1x5x512xf32>
    %2 = vector.shape_cast %1 : vector<1x5x512xf32> to vector<5x512xf32>
    %cst = arith.constant dense<0.000000e+00> : vector<24x512xf32>
    %3 = tpu.matmul %0, %2, %cst {dimension_numbers = #tpu.dot_dimension_numbers<[1], [0], [0], [1], [0, 0, 1, 1], [], []>} : vector<24x5xf32>, vector<5x512xf32>, vector<24x512xf32> -> vector<24x512xf32>
    %c0_4 = arith.constant 0 : index
    %c0_5 = arith.constant 0 : index
    %c0_6 = arith.constant 0 : index
    %4 = vector.load %arg7[%c0_4, %c0_5, %c0_6] : memref<1x24x512xf32, #tpu.memory_space<vmem>>, vector<1x24x512xf32>
    %5 = vector.shape_cast %4 : vector<1x24x512xf32> to vector<24x512xf32>
    %6 = vector.shape_cast %3 : vector<24x512xf32> to vector<1x24x512xf32>
    tpu.vector_store %arg7[%c0_4, %c0_5, %c0_6], %6 {strides = array<i32>} : memref<1x24x512xf32, #tpu.memory_space<vmem>>, vector<1x24x512xf32>,
    %7 = arith.negf %3 : vector<24x512xf32>
    %8 = math.exp %7 : vector<24x512xf32>
    %cst_7 = arith.constant 1.000000e+00 : f32
    %9 = vector.broadcast %cst_7 : f32 to vector<24x512xf32>
    %10 = arith.addf %9, %8 : vector<24x512xf32>
    %11 = arith.divf %9, %10 : vector<24x512xf32>
    %c0_8 = arith.constant 0 : index
    %c0_9 = arith.constant 0 : index
    %12 = vector.load %arg4[%c0_8, %c0_9] : memref<24x4xf32, #tpu.memory_space<vmem>>, vector<24x4xf32>
    %13 = vector.extract_strided_slice %12 {offsets = [0, 0], sizes = [24, 1], strides = [1, 1]} : vector<24x4xf32> to vector<24x1xf32>
    %14 = vector.extract_strided_slice %12 {offsets = [0, 1], sizes = [24, 1], strides = [1, 1]} : vector<24x4xf32> to vector<24x1xf32>
    %15 = vector.extract_strided_slice %12 {offsets = [0, 2], sizes = [24, 1], strides = [1, 1]} : vector<24x4xf32> to vector<24x1xf32>
    %16 = vector.extract_strided_slice %12 {offsets = [0, 3], sizes = [24, 1], strides = [1, 1]} : vector<24x4xf32> to vector<24x1xf32>
    %17 = vector.broadcast %13 : vector<24x1xf32> to vector<24x512xf32>
    %18 = arith.mulf %17, %11 : vector<24x512xf32>
    %19 = vector.broadcast %14 : vector<24x1xf32> to vector<24x512xf32>
    %20 = arith.addf %18, %19 : vector<24x512xf32>
    %21 = arith.mulf %20, %11 : vector<24x512xf32>
    %c0_10 = arith.constant 0 : index
    %c0_11 = arith.constant 0 : index
    %22 = vector.load %arg5[%c0_10, %c0_11] : memref<1x512xf32, #tpu.memory_space<vmem>>, vector<1x512xf32>
    %23 = vector.broadcast %15 : vector<24x1xf32> to vector<24x512xf32>
    %24 = vector.broadcast %22 : vector<1x512xf32> to vector<24x512xf32>
    %25 = arith.mulf %23, %24 : vector<24x512xf32>
    %26 = arith.addf %21, %25 : vector<24x512xf32>
    %c0_12 = arith.constant 0 : index
    %c0_13 = arith.constant 0 : index
    %27 = vector.load %arg6[%c0_12, %c0_13] : memref<1x512xf32, #tpu.memory_space<vmem>>, vector<1x512xf32>
    %28 = vector.broadcast %16 : vector<24x1xf32> to vector<24x512xf32>
    %29 = vector.broadcast %27 : vector<1x512xf32> to vector<24x512xf32>
    %30 = arith.mulf %28, %29 : vector<24x512xf32>
    %31 = arith.addf %26, %30 : vector<24x512xf32>
    %c0_14 = arith.constant 0 : index
    %c0_15 = arith.constant 0 : index
    %c0_16 = arith.constant 0 : index
    %32 = vector.load %arg8[%c0_14, %c0_15, %c0_16] : memref<1x24x512xf32, #tpu.memory_space<vmem>>, vector<1x24x512xf32>
    %33 = vector.shape_cast %32 : vector<1x24x512xf32> to vector<24x512xf32>
    %34 = vector.shape_cast %31 : vector<24x512xf32> to vector<1x24x512xf32>
    tpu.vector_store %arg8[%c0_14, %c0_15, %c0_16], %34 {strides = array<i32>} : memref<1x24x512xf32, #tpu.memory_space<vmem>>, vector<1x24x512xf32>,
    return
  }
  func.func @transform_0(%arg0: i32, %arg1: i32) -> (i32, i32, i32) {
    %c0_i32 = arith.constant 0 : i32
    %c0_i32_0 = arith.constant 0 : i32
    return %arg1, %c0_i32, %arg0 : i32, i32, i32
  }
  func.func @transform_1(%arg0: i32, %arg1: i32) -> (i32, i32) {
    %c0_i32 = arith.constant 0 : i32
    %c0_i32_0 = arith.constant 0 : i32
    %c0_i32_1 = arith.constant 0 : i32
    return %c0_i32, %c0_i32_0 : i32, i32
  }
  func.func @transform_2(%arg0: i32, %arg1: i32) -> (i32, i32) {
    %c0_i32 = arith.constant 0 : i32
    %c0_i32_0 = arith.constant 0 : i32
    %c0_i32_1 = arith.constant 0 : i32
    return %c0_i32, %c0_i32_0 : i32, i32
  }
  func.func @transform_3(%arg0: i32, %arg1: i32) -> (i32, i32) {
    %c0_i32 = arith.constant 0 : i32
    %c0_i32_0 = arith.constant 0 : i32
    return %c0_i32, %arg0 : i32, i32
  }
  func.func @transform_4(%arg0: i32, %arg1: i32) -> (i32, i32) {
    %c0_i32 = arith.constant 0 : i32
    %c0_i32_0 = arith.constant 0 : i32
    return %c0_i32, %arg0 : i32, i32
  }
  func.func @transform_5(%arg0: i32, %arg1: i32) -> (i32, i32, i32) {
    %c0_i32 = arith.constant 0 : i32
    %c0_i32_0 = arith.constant 0 : i32
    return %arg1, %c0_i32, %arg0 : i32, i32, i32
  }
  func.func @transform_6(%arg0: i32, %arg1: i32) -> (i32, i32, i32) {
    %c0_i32 = arith.constant 0 : i32
    %c0_i32_0 = arith.constant 0 : i32
    return %arg1, %c0_i32, %arg0 : i32, i32, i32
  }
}

</mosaic_0001>

<bundles_post_ra>
// kernel: tpu_custom_call.1
= control target key start
LH: loop header
LB: loop body
LE: loop exit
PB: predicated region body
PF: predicated region fallthrough
CT: control target
= control target key end

     0   :  { %12 = vsyncpa [#allocation3], 0  ;;  %s1703_s0 = inlined_call_operand.vmem [shape: f32[2,5,1024], index: 0, kind: input, shape index: {}]   ;;  %s1704_s1 = inlined_call_operand.vmem [shape: f32[24,5], index: 1, kind: input, shape index: {}]   ;;  %s1705_s2 = inlined_call_operand.vmem [shape: f32[24,4], index: 2, kind: input, shape index: {}]   ;;  %s1706_s3 = inlined_call_operand.vmem [shape: f32[1,1024], index: 3, kind: input, shape index: {}]   ;;  %s1707_s4 = inlined_call_operand.vmem [shape: f32[1,1024], index: 4, kind: input, shape index: {}]   ;;  %s1708_s5 = inlined_call_operand.hbm [shape: f32[2,24,1024], index: 5, kind: output, shape index: {0}]   ;;  %s1709_s6 = inlined_call_operand.hbm [shape: f32[2,24,1024], index: 6, kind: output, shape index: {1}]  }
   0x1   :  { %14 = vsyncpa [#allocation3 + $0x1], 0 }
   0x2   :  { %15 = vsyncpa [#allocation5], 0 }
   0x3   :  { %17 = vsyncpa [#allocation5 + $0x1], 0  ;;  %s1335_s21 = smov 0   ;;  %s1337_s22 = smov 0  }
   0x4   :  { %s1339_s23 = smov 0   ;;  %s1341_s24 = smov 0  }
   0x5   :  { %s1343_s25 = smov 0   ;;  %s1345_s26 = smov 0  }
   0x6   :  { %s1347_s27 = smov 0   ;;  %s1349_s28 = smov 0  }
   0x7 LB: > { %s981_s29 = sadd.s32 4294967295, %s1288_s28   ;;  %s982_s30 = sadd.s32 4294967294, %s1288_s28   ;;  %s1288_s28 = sphi %s1349_s28, %s23_s28   ;;  %s1284_s27 = sphi %s1347_s27, %s1727_s27   ;;  %s1280_s26 = sphi %s1345_s26, %s1726_s26   ;;  %s1276_s25 = sphi %s1343_s25, %s1725_s25   ;;  %s1272_s24 = sphi %s1341_s24, %s1724_s24   ;;  %s1268_s23 = sphi %s1339_s23, %s1723_s23   ;;  %s1264_s22 = sphi %s1337_s22, %s1722_s22   ;;  %s1260_s21 = sphi %s1335_s21, %s1721_s21  }
   0x8   : > { %s32_s7 = sadd.s32 1, %s1280_s26  ;;  %s35_s8 = sadd.s32 1, %s1284_s27 }
   0x9   : > { %p33_p0 = scmp.ge.s32.totalorder %s32_s7, 2  ;;  %p176_p1 = scmp.ne.s32.totalorder %s1268_s23, %s1264_s22 }
   0xa   : > { %p177_p2 = scmp.eq.s32.totalorder %s981_s29, 3  ;;  %p182_p5 = scmp.ne.s32.totalorder %s1264_s22, %s1260_s21 }
   0xb   : > { %s1729_s7 = smov (%p33_p0, %s32_s7), 0  ;;  %s1731_s8 = smov (!%p33_p0, %s35_s8), %s1284_s27 }
   0xc   : > { %s161_s9 = ssub.s32 %s1280_s26, %s1729_s7  ;;  %p1384_p3 = por %p177_p2, %p176_p1 }
   0xd   : > { %p37_p4 = scmp.ge.s32.totalorder %s1731_s8, 2  ;;  %p183_p6 = scmp.eq.s32.totalorder %s982_s30, 3 }
   0xe   : > { %p985_p7 = scmp.ge.s32.totalorder %s1288_s28, 1  ;;  %p264_p9 = scmp.lt.s32.totalorder %s1288_s28, 5 }
   0xf   : > { %s1733_s8 = smov (%p37_p4, %s1731_s8), 0  ;;  %p1393_p8 = por %p183_p6, %p182_p5 }
  0x10   : > { %1714 = sst [smem:[#allocation8_spill]] %s1733_s8  ;;  %s162_s12 = ssub.s32 %s1284_s27, %s1733_s8 }
  0x11   : > { %s166_s13 = sadd.s32 1, %s1268_s23  ;;  %s163_s14 = sor.u32 %s162_s12, %s161_s9 }
  0x12   : > { %p265_p10 = pnand %p985_p7, %p264_p9  ;;  %p164_p11 = scmp.eq.s32.totalorder %s163_s14, 0 }
  0x13   : > { %s1404_s16 = sshll.u32 (!%p265_p10), %s1276_s25, 2  ;;  %p312_p12 = scmp.lt.s32.totalorder (!%p265_p10), %s1272_s24, 1  ;;  %v1290_v0 = vmov (!%p265_p10), 0.0   ;;  %v615_v1 = vld [vmem:[%s1705_s2 + $0x10] sm:$0xff] (!%p265_p10)  ;;  %v1291_v2 = vmov (!%p265_p10), 0   ;;  %v613_v3 = vld [vmem:[%s1705_s2] sm:$0xff] (!%p265_p10)  ;;  %v693_v29 = vlaneseq (!%p265_p10) }
  0x14   : > { %s1402_s15 = scalar_select %p164_p11, %s1268_s23, %s166_s13  }
  0x15   : > { %268 = sbr.rel (%p265_p10) target bundleno = 323 (0x143), region = 40  ;;  %p314_p13 = scmp.lt.s32.totalorder (!%p265_p10), %s1404_s16, 7  ;;  %427 = vmatprep.mubr.f32.mxu0 (!%p265_p10), %v1290_v0  ;;  %510 = vmatprep.mubr.f32.mxu1 (!%p265_p10), %v1290_v0  ;;  %v614_v4 = vld [vmem:[%s1705_s2 + $0x8] sm:$0xff] (!%p265_p10)  ;;  %vm350_vm0 = vcmask (!%p265_p10), 1044480   ;;  %v333_v5 = vld [vmem:[%s1704_s1] sm:$0xff] (!%p265_p10)  ;;  %vm340_vm1 = vcmask (!%p265_p10), 39936  }
  0x16   : > { %1107 = vset.pattern.permute.xlu1 (!%p265_p10), %v1291_v2  ;;  %1106 = vset.pattern.permute.xlu0 (!%p265_p10), %v1291_v2  ;;  %v1292_v6 = vmov (!%p265_p10), 1   ;;  %v334_v11 = vld [vmem:[%s1704_s1 + $0x8] sm:$0xff] (!%p265_p10)  ;;  %v335_v12 = vld [vmem:[%s1704_s1 + $0x10] sm:$0xff] (!%p265_p10)  ;;  %v1293_v13 = vmov (!%p265_p10), 2   ;;  %v1294_v14 = vmov (!%p265_p10), 3   ;;  %s1443_s12 = sand.u32 (!%p265_p10), 1, %s1264_s22  }
  0x17   : > { %628 = vperm.xlu1 (!%p265_p10), %1107, %v615_v1   ;;  %618 = vperm.xlu0 (!%p265_p10), %1106, %v613_v3   ;;  %v1483_v40 = vshrl.u32 (!%p265_p10), %v693_v29, 7  ;;  %s1295_s29 = smov (!%p265_p10), [#allocation2]  }
  0x1b   : > { %1108 = vset.pattern.permute.xlu1 (!%p265_p10), %v1292_v6  ;;  %623 = vperm.xlu0 (!%p265_p10), %1106, %v614_v4  }
  0x1c   : > { %s313_s19 = scalar_select %p312_p12, %s1272_s24, 1  ;;  %644 = vperm.xlu1 %1108, %v613_v3  }
  0x1d   : > { %s1416_s25 = scalar_select %p314_p13, %s1404_s16, 7 }
  0x1e   : > { %s987_s30 = sshll.u32 %s313_s19, 3 }
  0x1f   : > { %s317_s13 = sadd.s32 %s987_s30, %s1416_s25  ;;  %1109 = vset.pattern.permute.xlu0 %v1292_v6 }
  0x20   : > { %s988_s14 = sshll.u32 %s317_s13, 3  ;;  %652 = vperm.xlu1 %1108, %v615_v1   ;;  %648 = vperm.xlu0 %1109, %v614_v4   ;;  %s1712_s13 = smul.u32 96, %s1443_s12 }
  0x21   : > { %s319_s8 = scalar_lea.vmem %s1703_s0, %s988_s14  ;;  %s1020_s14 = smul.u32 24, %s1272_s24 }
  0x22   : > { %v337_v7 = vld [vmem:[%s319_s8 + $0x8] sm:$0x1f]  ;;  %v339_v8 = vld [vmem:[%s319_s8 + $0x18] sm:$0x1f]  ;;  %v336_v9 = vld [vmem:[%s319_s8] sm:$0x1f] }
  0x23   : > { %991 = vmatprep.subr.msk.mxu0 %vm350_vm0, %v337_v7  ;;  %996 = vmatprep.subr.msk.mxu1 %vm350_vm0, %v339_v8  ;;  %v338_v10 = vld [vmem:[%s319_s8 + $0x10] sm:$0x1f]  ;;  %s1454_s17 = sadd.s32 %s1020_s14, %s1404_s16  ;;  %s1458_s18 = scalar_lea.vmem [#allocation2], %s1712_s13 }
  0x24   : > { %992 = vmatpush1.msk.msra.mxu0 %vm350_vm0, %v336_v9  ;;  %997 = vmatpush1.msk.msra.mxu1 %vm350_vm0, %v338_v10  ;;  %s1711_s24 = sshll.u32 %s1454_s17, 7  ;;  %s828_s16 = sshll.u32 %s1458_s18, 4  ;;  %s1481_s16 = int_to_ptr.vmem [resolvable:$true] %s828_s16 }
  0x25   : > { %993 = vmatmul.mubr.msk.f32.vlgmr.msra.gmra.mrb[0].mxu0 %vm340_vm1, %v333_v5  ;;  %998 = vmatmul.mubr.msk.f32.vlgmr.msra.gmra.mrb[0].mxu1 %vm340_vm1, %v333_v5  ;;  %s1473_s19 = scalar_lea.hbm %s1708_s5, %s1711_s24  ;;  %s808_s14 = scalar_lea.sflag [#allocation3], %s1443_s12 }
  0x26   : > { %433 = vmatprep.mubr.f32.mxu0 %v1290_v0  ;;  %516 = vmatprep.mubr.f32.mxu1 %v1290_v0  ;;  %s1162_s20 = scalar_lea.vmem %s1481_s16, 1536  ;;  %s1166_s24 = sshll.u32 %s1295_s29, 4  ;;  %s1167_s24 = int_to_ptr.vmem [resolvable:$false] %s1166_s24 }
  0x27   : > { %1110 = vset.pattern.permute.xlu1 %v1293_v13  ;;  %1111 = vset.pattern.permute.xlu0 %v1293_v13  ;;  %p1163_p0 = scmp.ne.s32.totalorder %s1481_s16, %s1162_s20  ;;  %s1168_s13 = scalar_lea.vmem %s1167_s24, 3072 }
  0x28   : > { %681 = vperm.xlu1 %1110, %v613_v3   ;;  %685 = vperm.xlu0 %1111, %v614_v4   ;;  %p1169_p4 = scmp.lt.s32.totalorder %s1481_s16, %s1167_s24  ;;  %p1170_p5 = scmp.lt.s32.totalorder %s1168_s13, %s1162_s20 }
  0x29   : > { %994 = vmatmul.mubr.msk.f32.gmra.mrb[2].mxu0 %vm340_vm1, %v334_v11  ;;  %999 = vmatmul.mubr.msk.f32.gmra.mrb[2].mxu1 %vm340_vm1, %v334_v11  ;;  %p1164_p1 = pnand %p1163_p0, %p1384_p3 }
  0x2a   : > { %439 = vmatprep.mubr.f32.mxu0 %v1290_v0  ;;  %522 = vmatprep.mubr.f32.mxu1 %v1290_v0  ;;  %p1171_p6 = por %p1170_p5, %p1169_p4 }
  0x2b   : > { %p1165_p2 = pneg %p1164_p1 }
  0x2c   : > { %689 = vperm.xlu1 %1110, %v615_v1   ;;  %1113 = vset.pattern.permute.xlu0 %v1294_v14 }
  0x2d   : > { %995 = vmatmul.mubr.msk.f32.gmra.mrb[4].mxu0 %vm340_vm1, %v335_v12  ;;  %1000 = vmatmul.mubr.msk.f32.gmra.mrb[4].mxu1 %vm340_vm1, %v335_v12  ;;  %p1172_p7 = pnand %p1171_p6, %p1165_p2 }
  0x2e   : > { %743 = vperm.xlu0 %1113, %v614_v4  }
  0x30   : > { %1112 = vset.pattern.permute.xlu1 %v1294_v14 }
  0x31   : > { %739 = vperm.xlu1 %1112, %v613_v3  }
  0x35   : > { %747 = vperm.xlu1 %1112, %v615_v1  }
  0x96   : > { %v1440_v15 = vpop.permute.xlu1 %628  ;;  %v1449_v17 = vpop.permute.xlu0 %618 }
  0x9a   : > { %v1477_v36 = vpop.permute.xlu0 %623 }
  0x9b   : > { %v1445_v16 = vpop.permute.xlu1 %644 }
  0x9f   : > { %v1451_v18 = vpop.permute.xlu1 %652 }
  0xa7   : > { %v1479_v37 = vpop.permute.xlu1 %681 }
  0xf8   : > { %v429_v19 = vpop.f32.mrb[0].mxu0  ;;  %v512_v20 = vpop.f32.mrb[0].mxu1 }
  0xf9   : > { %529 = vst [vmem:[%s1458_s18] sm:$0xff] %v429_v19  ;;  %v1001_v21 = vmul.f32 -1.442695, %v429_v19  ;;  %531 = vst [vmem:[%s1458_s18 + $0x10] sm:$0xff] %v512_v20  ;;  %v1003_v22 = vmul.f32 -1.442695, %v512_v20  ;;  %v431_v23 = vpop.f32.mrb[1].mxu0 }
  0xfa   : > { %v514_v24 = vpop.f32.mrb[1].mxu1  ;;  %530 = vst [vmem:[%s1458_s18 + $0x8] sm:$0xff] %v431_v23  ;;  %v1002_v25 = vmul.f32 -1.442695, %v431_v23 }
  0xfb   : > { %532 = vst [vmem:[%s1458_s18 + $0x18] sm:$0xff] %v514_v24  ;;  %v1004_v26 = vmul.f32 -1.442695, %v514_v24  ;;  %1114 = vpow2.f32 %v1001_v21 }
  0xfc   : > { %1116 = vpow2.f32 %v1003_v22  ;;  %v435_v27 = vpop.f32.mrb[2].mxu0  ;;  %v518_v28 = vpop.f32.mrb[2].mxu1 }
  0xfd   : > { %1118 = vpow2.f32 %v1002_v25  ;;  %533 = vst [vmem:[%s1458_s18 + $0x20] sm:$0xff] %v435_v27  ;;  %v1005_v30 = vmul.f32 -1.442695, %v435_v27  ;;  %535 = vst [vmem:[%s1458_s18 + $0x30] sm:$0xff] %v518_v28  ;;  %v1007_v31 = vmul.f32 -1.442695, %v518_v28 }
  0xfe   : > { %v437_v32 = vpop.f32.mrb[3].mxu0  ;;  %v520_v33 = vpop.f32.mrb[3].mxu1  ;;  %1120 = vpow2.f32 %v1004_v26 }
  0xff   : > { %534 = vst [vmem:[%s1458_s18 + $0x28] sm:$0xff] %v437_v32  ;;  %v1006_v34 = vmul.f32 -1.442695, %v437_v32  ;;  %536 = vst [vmem:[%s1458_s18 + $0x38] sm:$0xff] %v520_v33  ;;  %v1008_v35 = vmul.f32 -1.442695, %v520_v33  ;;  %1122 = vpow2.f32 %v1005_v30 }
 0x100   : > { %1124 = vpow2.f32 %v1007_v31  ;;  %v441_v38 = vpop.f32.mrb[4].mxu0  ;;  %v524_v39 = vpop.f32.mrb[4].mxu1 }
 0x101   : > { %1126 = vpow2.f32 %v1006_v34  ;;  %537 = vst [vmem:[%s1458_s18 + $0x40] sm:$0xff] %v441_v38  ;;  %v1009_v41 = vmul.f32 -1.442695, %v441_v38  ;;  %539 = vst [vmem:[%s1458_s18 + $0x50] sm:$0xff] %v524_v39  ;;  %v1011_v42 = vmul.f32 -1.442695, %v524_v39 }
 0x102   : > { %v443_v43 = vpop.f32.mrb[5].mxu0  ;;  %v526_v44 = vpop.f32.mrb[5].mxu1  ;;  %1128 = vpow2.f32 %v1008_v35 }
 0x103   : > { %538 = vst [vmem:[%s1458_s18 + $0x48] sm:$0xff] %v443_v43  ;;  %v1010_v45 = vmul.f32 -1.442695, %v443_v43  ;;  %540 = vst [vmem:[%s1458_s18 + $0x58] sm:$0xff] %v526_v44  ;;  %v1012_v46 = vmul.f32 -1.442695, %v526_v44  ;;  %1130 = vpow2.f32 %v1009_v41 }
 0x104   : > { %1175 = shalt.err (!%p1172_p7)
}
 0x105   : > { %s1176_s18 = scalar_lea.hbm %s1473_s19, 1536  ;;  %s1180_s29 = scalar_lea.hbm %s1708_s5, 6144 }
 0x106   : > { %p1177_p9 = scmp.ne.s32.totalorder %s1473_s19, %s1176_s18  ;;  %p1181_p12 = scmp.lt.u32.totalorder %s1473_s19, %s1708_s5 }
 0x107   : > { %p1182_p13 = scmp.lt.u32.totalorder %s1180_s29, %s1176_s18  ;;  %p1184_p1 = scmp.lt.u32.totalorder %s1176_s18, %s1473_s19 }
 0x108   : > { %p1178_p10 = pnand %p1177_p9, %p1384_p3 }
 0x109   : > { %p1183_p0 = por %p1182_p13, %p1181_p12 }
 0x10a   : > { %p1179_p11 = pneg %p1178_p10 }
 0x10b   : > { %p1185_p2 = por %p1184_p1, %p1183_p0 }
 0x10d   : > { %p1186_p4 = pnand %p1185_p2, %p1179_p11 }
 0x10f   : > { %1189 = shalt.err (!%p1186_p4)
}
 0x110   : > { %s1296_s13 = smov 512   ;;  %s1297_s20 = smov 1024   ;;  %1132 = vpow2.f32 %v1011_v42  ;;  %v1520_v47 = vpop.permute.xlu0 %648  ;;  %v1115_v48 = vpop.eup %1114  ;;  %v695_v49 = vsub.s32 0, %v1483_v40  ;;  %v699_v52 = vsub.s32 1, %v1483_v40  ;;  %v703_v53 = vsub.s32 2, %v1483_v40 }
 0x111   : > { %s1298_s30 = smov 32   ;;  %s329_s8 = scalar_lea.vmem %s1707_s4, %s1416_s25  ;;  %1134 = vpow2.f32 %v1010_v45  ;;  %v1117_v50 = vpop.eup %1116  ;;  %v577_v51 = vadd.f32 1.0, %v1115_v48  ;;  %v707_v57 = vsub.s32 3, %v1483_v40  ;;  %v690_v58 = vpop.permute.xlu1 %689 }
 0x112   : > { %1022 = dma.vmem_to_hbm [thread:$0]  (%p1384_p3), %s1481_s16, 1536, %s1473_s19, %s808_s14, %s1296_s13, %s1297_s20, %s1298_s30   ;;  %1136 = vpow2.f32 %v1012_v46  ;;  %v1119_v55 = vpop.eup %1118  ;;  %v579_v56 = vadd.f32 1.0, %v1117_v50 }
 0x113   : > { %s1716_s19 = scalar_lea.vmem %s1706_s3, %s1416_s25  ;;  %v1121_v59 = vpop.eup %1120  ;;  %1138 = vrcp.f32 %v577_v51  ;;  %v578_v60 = vadd.f32 1.0, %v1119_v55  ;;  %v737_v61 = vld [vmem:[%s329_s8] sm:$0xf]  ;;  %s1717_s25 = smul.u32 96, %s1443_s12 }
 0x114   : > { %v679_v54 = vld [vmem:[%s1716_s19] sm:$0xf]  ;;  %v1123_v62 = vpop.eup %1122  ;;  %1140 = vrcp.f32 %v579_v56  ;;  %v580_v63 = vadd.f32 1.0, %v1121_v59  ;;  %v686_v5 = vpop.permute.xlu0 %685  ;;  %v754_v9 = vrot.slane %v737_v61, %v695_v49  ;;  %v758_v12 = vrot.slane %v737_v61, %v699_v52  ;;  %s1718_s9 = sshll.u32 %s1454_s17, 7  ;;  %s1299_s19 = smov [#allocation4]  }
 0x115   : > { %v696_v0 = vrot.slane %v679_v54, %v695_v49  ;;  %v1125_v1 = vpop.eup %1124  ;;  %1142 = vrcp.f32 %v578_v60  ;;  %v581_v2 = vadd.f32 1.0, %v1123_v62  ;;  %v700_v3 = vrot.slane %v679_v54, %v699_v52  ;;  %v740_v21 = vpop.permute.xlu1 %739  ;;  %s1607_s14 = scalar_lea.vmem [#allocation4], %s1717_s25  ;;  %s1637_s29 = scalar_lea.hbm %s1709_s6, %s1718_s9 }
 0x116   : > { %v704_v4 = vrot.slane %v679_v54, %v703_v53  ;;  %v1127_v6 = vpop.eup %1126  ;;  %1144 = vrcp.f32 %v580_v63  ;;  %v583_v7 = vadd.f32 1.0, %v1125_v1  ;;  %v708_v8 = vrot.slane %v679_v54, %v707_v57  ;;  %s846_s24 = sshll.u32 %s1607_s14, 4  ;;  %s1194_s25 = sshll.u32 %s1299_s19, 4  ;;  %s1644_s24 = int_to_ptr.vmem [resolvable:$true] %s846_s24  ;;  %s1195_s25 = int_to_ptr.vmem [resolvable:$false] %s1194_s25 }
 0x117   : > { %v1129_v10 = vpop.eup %1128  ;;  %1146 = vrcp.f32 %v581_v2  ;;  %v582_v11 = vadd.f32 1.0, %v1127_v6  ;;  %v762_v13 = vrot.slane %v737_v61, %v703_v53  ;;  %v713_v20 = vmul.f32 %v696_v0, %v1479_v37  ;;  %s1190_s16 = scalar_lea.vmem %s1644_s24, 1536  ;;  %s1196_s9 = scalar_lea.vmem %s1195_s25, 3072 }
 0x118   : > { %v1131_v14 = vpop.eup %1130  ;;  %1148 = vrcp.f32 %v583_v7  ;;  %v584_v19 = vadd.f32 1.0, %v1129_v10  ;;  %v1536_v22 = vrot.slane %v737_v61, %v707_v57  ;;  %v1539_v25 = vmul.f32 %v700_v3, %v1479_v37  ;;  %v744_v35 = vpop.permute.xlu0 %743  ;;  %p1191_p5 = scmp.ne.s32.totalorder %s1644_s24, %s1190_s16  ;;  %p1197_p9 = scmp.lt.s32.totalorder %s1644_s24, %s1195_s25 }
 0x119   : > { %1150 = vrcp.f32 %v582_v11  ;;  %v585_v24 = vadd.f32 1.0, %v1131_v14  ;;  %v715_v26 = vmul.f32 %v704_v4, %v1479_v37  ;;  %v1543_v29 = vmul.f32 %v708_v8, %v1479_v37  ;;  %v1566_v49 = vpop.permute.xlu1 %747  ;;  %p1198_p10 = scmp.lt.s32.totalorder %s1196_s9, %s1190_s16 }
 0x11a   : > { %v1133_v23 = vpop.eup %1132  ;;  %1152 = vrcp.f32 %v584_v19  ;;  %v1545_v30 = vmul.f32 %v696_v0, %v686_v5  ;;  %v1547_v33 = vmul.f32 %v700_v3, %v686_v5  ;;  %v1549_v34 = vmul.f32 %v704_v4, %v686_v5  ;;  %p1192_p6 = pnand %p1191_p5, %p1384_p3 }
 0x11b   : > { %v1135_v27 = vpop.eup %1134  ;;  %v587_v28 = vadd.f32 1.0, %v1133_v23  ;;  %1154 = vrcp.f32 %v585_v24  ;;  %v1551_v39 = vmul.f32 %v696_v0, %v690_v58  ;;  %v1553_v40 = vmul.f32 %v708_v8, %v686_v5  ;;  %p1199_p11 = por %p1198_p10, %p1197_p9 }
 0x11c   : > { %v1137_v31 = vpop.eup %1136  ;;  %v586_v32 = vadd.f32 1.0, %v1135_v27  ;;  %v1555_v37 = vmul.f32 %v700_v3, %v690_v58  ;;  %v1557_v42 = vmul.f32 %v704_v4, %v690_v58  ;;  %v1559_v43 = vmul.f32 %v708_v8, %v690_v58  ;;  %p1193_p7 = pneg %p1192_p6 }
 0x11d   : > { %1156 = vrcp.f32 %v587_v28  ;;  %v588_v38 = vadd.f32 1.0, %v1137_v31  ;;  %v1139_v41 = vpop.eup %1138  ;;  %v1562_v46 = vmul.f32 %v754_v9, %v744_v35  ;;  %v1564_v48 = vmul.f32 %v758_v12, %v744_v35 }
 0x11e   : > { %1158 = vrcp.f32 %v586_v32  ;;  %v1141_v44 = vpop.eup %1140  ;;  %v631_v45 = vmul.f32 %v1139_v41, %v1449_v17  ;;  %v771_v52 = vmul.f32 %v754_v9, %v740_v21  ;;  %v1569_v53 = vmul.f32 %v762_v13, %v744_v35  ;;  %p1200_p12 = pnand %p1199_p11, %p1193_p7 }
 0x11f   : > { %1160 = vrcp.f32 %v588_v38  ;;  %v1143_v50 = vpop.eup %1142  ;;  %v633_v51 = vmul.f32 %v1141_v44, %v1449_v17  ;;  %v1572_v54 = vmul.f32 %v1536_v22, %v744_v35  ;;  %v772_v58 = vmul.f32 %v758_v12, %v740_v21 }
 0x120   : > { %v1145_v55 = vpop.eup %1144  ;;  %v632_v56 = vmul.f32 %v1143_v50, %v1449_v17  ;;  %v655_v57 = vadd.f32 %v1445_v16, %v631_v45  ;;  %v773_v59 = vmul.f32 %v762_v13, %v740_v21  ;;  %v774_v63 = vmul.f32 %v1536_v22, %v740_v21 }
 0x121   : > { %v1147_v60 = vpop.eup %1146  ;;  %v634_v61 = vmul.f32 %v1145_v55, %v1449_v17  ;;  %v657_v62 = vadd.f32 %v1445_v16, %v633_v51  ;;  %v1580_v0 = vmul.f32 %v754_v9, %v1566_v49  ;;  %v1585_v5 = vmul.f32 %v758_v12, %v1566_v49 }
 0x122   : > { %v1149_v1 = vpop.eup %1148  ;;  %v656_v2 = vadd.f32 %v1445_v16, %v632_v56  ;;  %v635_v3 = vmul.f32 %v1147_v60, %v1477_v36  ;;  %v667_v4 = vmul.f32 %v1139_v41, %v655_v57  ;;  %v781_v10 = vmul.f32 %v762_v13, %v1566_v49 }
 0x123   : > { %v1151_v6 = vpop.eup %1150  ;;  %v658_v7 = vadd.f32 %v1445_v16, %v634_v61  ;;  %v637_v17 = vmul.f32 %v1149_v1, %v1477_v36  ;;  %v669_v8 = vmul.f32 %v1141_v44, %v657_v62 }
 0x124   : > { %v1153_v11 = vpop.eup %1152  ;;  %v636_v9 = vmul.f32 %v1151_v6, %v1477_v36  ;;  %v668_v14 = vmul.f32 %v1143_v50, %v656_v2  ;;  %v725_v19 = vadd.f32 %v713_v20, %v667_v4  ;;  %v659_v21 = vadd.f32 %v1520_v47, %v635_v3 }
 0x125   : > { %v1155_v23 = vpop.eup %1154  ;;  %v638_v24 = vmul.f32 %v1153_v11, %v1477_v36  ;;  %v670_v12 = vmul.f32 %v1145_v55, %v658_v7  ;;  %v727_v27 = vadd.f32 %v715_v26, %v669_v8  ;;  %v661_v28 = vadd.f32 %v1520_v47, %v637_v17 }
 0x126   : > { %v639_v31 = vmul.f32 %v1155_v23, %v1440_v15  ;;  %v726_v32 = vadd.f32 %v1539_v25, %v668_v14  ;;  %v660_v13 = vadd.f32 %v1520_v47, %v636_v9  ;;  %v671_v35 = vmul.f32 %v1147_v60, %v659_v21 }
 0x127   : > { %v1157_v16 = vpop.eup %1156  ;;  %v728_v41 = vadd.f32 %v1543_v29, %v670_v12  ;;  %v662_v36 = vadd.f32 %v1520_v47, %v638_v24  ;;  %v673_v44 = vmul.f32 %v1149_v1, %v661_v28  ;;  %v783_v55 = vadd.f32 %v771_v52, %v725_v19 }
 0x128   : > { %v1159_v38 = vpop.eup %1158  ;;  %v641_v20 = vmul.f32 %v1157_v16, %v1440_v15  ;;  %v663_v50 = vadd.f32 %v1451_v18, %v639_v31  ;;  %v672_v51 = vmul.f32 %v1151_v6, %v660_v13  ;;  %v784_v60 = vadd.f32 %v772_v58, %v726_v32 }
 0x129   : > { %v1161_v26 = vpop.eup %1160  ;;  %v640_v45 = vmul.f32 %v1159_v38, %v1440_v15  ;;  %v674_v57 = vmul.f32 %v1153_v11, %v662_v36  ;;  %v785_v62 = vadd.f32 %v773_v59, %v727_v27  ;;  %v786_v2 = vadd.f32 %v774_v63, %v728_v41  ;;  %795 = vst [vmem:[%s1607_s14] sm:$0xff] %v783_v55 }
 0x12a   : > { %v642_v25 = vmul.f32 %v1161_v26, %v1440_v15  ;;  %v665_v56 = vadd.f32 %v1451_v18, %v641_v20  ;;  %v675_v29 = vmul.f32 %v1155_v23, %v663_v50  ;;  %796 = vst [vmem:[%s1607_s14 + $0x8] sm:$0xff] %v784_v60  ;;  %v729_v52 = vadd.f32 %v1545_v30, %v671_v35 }
 0x12b   : > { %v664_v61 = vadd.f32 %v1451_v18, %v640_v45  ;;  %v730_v58 = vadd.f32 %v1547_v33, %v672_v51  ;;  %797 = vst [vmem:[%s1607_s14 + $0x10] sm:$0xff] %v785_v62  ;;  %798 = vst [vmem:[%s1607_s14 + $0x18] sm:$0xff] %v786_v2  ;;  %v731_v63 = vadd.f32 %v1549_v34, %v673_v44 }
 0x12c   : > { %v666_v47 = vadd.f32 %v1451_v18, %v642_v25  ;;  %v677_v15 = vmul.f32 %v1157_v16, %v665_v56  ;;  %v732_v1 = vadd.f32 %v1553_v40, %v674_v57  ;;  %v733_v3 = vadd.f32 %v1551_v39, %v675_v29 }
 0x12d   : > { %v676_v59 = vmul.f32 %v1159_v38, %v664_v61  ;;  %v787_v30 = vadd.f32 %v1562_v46, %v729_v52  ;;  %v788_v4 = vadd.f32 %v1564_v48, %v730_v58  ;;  %v789_v6 = vadd.f32 %v1569_v53, %v731_v63 }
 0x12e   : > { %v678_v18 = vmul.f32 %v1161_v26, %v666_v47  ;;  %v735_v33 = vadd.f32 %v1557_v42, %v677_v15  ;;  %v790_v34 = vadd.f32 %v1572_v54, %v732_v1  ;;  %v791_v39 = vadd.f32 %v1580_v0, %v733_v3 }
 0x12f   : > { %v734_v40 = vadd.f32 %v1555_v37, %v676_v59  ;;  %799 = vst [vmem:[%s1607_s14 + $0x20] sm:$0xff] %v787_v30  ;;  %800 = vst [vmem:[%s1607_s14 + $0x28] sm:$0xff] %v788_v4  ;;  %v782_v42 = vmul.f32 %v1536_v22, %v1566_v49 }
 0x130   : > { %v736_v46 = vadd.f32 %v1559_v43, %v678_v18  ;;  %v793_v48 = vadd.f32 %v781_v10, %v735_v33  ;;  %801 = vst [vmem:[%s1607_s14 + $0x30] sm:$0xff] %v789_v6  ;;  %802 = vst [vmem:[%s1607_s14 + $0x38] sm:$0xff] %v790_v34 }
 0x131   : > { %v792_v37 = vadd.f32 %v1585_v5, %v734_v40  ;;  %803 = vst [vmem:[%s1607_s14 + $0x40] sm:$0xff] %v791_v39 }
 0x132   : > { %v794_v53 = vadd.f32 %v782_v42, %v736_v46  ;;  %805 = vst [vmem:[%s1607_s14 + $0x50] sm:$0xff] %v793_v48 }
 0x133   : > { %804 = vst [vmem:[%s1607_s14 + $0x48] sm:$0xff] %v792_v37 }
 0x134   : > { %806 = vst [vmem:[%s1607_s14 + $0x58] sm:$0xff] %v794_v53 }
 0x135   : > { %1203 = shalt.err (!%p1200_p12)
}
 0x136   : > { %s1204_s14 = scalar_lea.hbm %s1637_s29, 1536  ;;  %s1208_s19 = scalar_lea.hbm %s1709_s6, 6144 }
 0x137   : > { %p1205_p13 = scmp.ne.s32.totalorder %s1637_s29, %s1204_s14  ;;  %p1209_p2 = scmp.lt.u32.totalorder %s1637_s29, %s1709_s6 }
 0x138   : > { %p1210_p4 = scmp.lt.u32.totalorder %s1208_s19, %s1204_s14  ;;  %p1212_p6 = scmp.lt.u32.totalorder %s1204_s14, %s1637_s29 }
 0x139   : > { %p1206_p0 = pnand %p1205_p13, %p1384_p3 }
 0x13a   : > { %p1211_p5 = por %p1210_p4, %p1209_p2 }
 0x13b   : > { %p1207_p1 = pneg %p1206_p0 }
 0x13c   : > { %p1213_p7 = por %p1212_p6, %p1211_p5 }
 0x13e   : > { %p1214_p9 = pnand %p1213_p7, %p1207_p1 }
 0x140   : > { %1217 = shalt.err (!%p1214_p9)
}
 0x141   : > { %s1719_s16 = scalar_lea.sflag [#allocation5], %s1443_s12 }
 0x142   : > { %1023 = dma.vmem_to_hbm [thread:$0]  (%p1384_p3), %s1644_s24, 1536, %s1637_s29, %s1719_s16, %s1296_s13, %s1297_s20, %s1298_s30  }
 0x143 PF: > { %p1033_p10 = scmp.ge.s32.totalorder %s1288_s28, 2  ;;  %s861_s17 = sand.u32 1, %s1260_s21  }
 0x144   : > { %s862_s9 = scalar_lea.sflag [#allocation3], %s861_s17 }
 0x145   : > { %p1027_p11 = pnand %p1033_p10, %p1393_p8 }
 0x147   : > { %1251 = dma.done.wait (!%p1027_p11), %s862_s9, 1536  }
 0x148   : > { %1253 = vsyncadd (!%p1027_p11), %s862_s9, 4294965760  ;;  %s871_s10 = scalar_lea.sflag [#allocation5], %s861_s17 }
 0x149   : > { %1255 = dma.done.wait (!%p1027_p11), %s871_s10, 1536  }
 0x14a   : > { %1257 = vsyncadd (!%p1027_p11), %s871_s10, 4294965760  ;;  %s23_s28 = sadd.s32 1, %s1288_s28   ;;  %s1720_s12 = sld [smem:[#allocation8_spill]] }
 0x14b   : > { %p20_p12 = scmp.ge.s32.totalorder %s23_s28, 6   ;;  %s1721_s21 = smov %s1264_s22 }
 0x14c   : > { %s1722_s22 = smov %s1268_s23  ;;  %s1723_s23 = smov %s1402_s15 }
 0x14d   : > { %s1724_s24 = smov %s1280_s26  ;;  %s1725_s25 = smov %s1284_s27 }
 0x14e   : > { %s1726_s26 = smov %s1729_s7  ;;  %22 = sbr.rel (!%p20_p12) target bundleno = 7 (0x7), region = 98 }
 0x150   : > { %s1727_s27 = smov %s1720_s12 }
 0x155   :  { %876 = vsyncpa [#allocation3], 1 }
 0x156   :  { %878 = vsyncpa [#allocation3 + $0x1], 1 }
 0x157   :  { %879 = vsyncpa [#allocation5], 1 }
 0x158   :  { %881 = vsyncpa [#allocation5 + $0x1], 1 }

</bundles_post_ra>
